<compile_context>
chip_gen: v7x
topology: tpu7x:2x2x1
jax: 0.10.0
libtpu: 0.0.40
codegen_flags: <defaults>
</compile_context>

<pallas_src>
import math

import jax
import jax.numpy as jnp
from jax.experimental import pallas as pl
from jax.experimental.pallas import tpu as pltpu


# ----------------------------- Pallas kernel ------------------------------ #
def decoder_kernel(z_ref, w1_ref, b1_ref, w2_ref, b2_ref, out_ref):
    """Batch-on-sublane MLP tile.

    z_ref:  (TILE_B, L)   batch tile
    w1_ref: (L, H)        Linear_1 weight, (in, out) layout
    b1_ref: (1, H)
    w2_ref: (H, D)        Linear_2 weight, (in, out) layout
    b2_ref: (1, D)
    out_ref:(TILE_B, D)
    """
    z = z_ref[...]

    # Linear_1 -> (Dropout = identity, eval mode) -> Tanh
    h = jnp.tanh(
        jnp.dot(z, w1_ref[...], preferred_element_type=jnp.float32)
        + b1_ref[...]                                    # (1, H) sublane-broadcast
    )                                                    # (TILE_B, H)

    # Linear_2 -> Sigmoid
    out_ref[...] = jax.nn.sigmoid(
        jnp.dot(h, w2_ref[...], preferred_element_type=jnp.float32)
        + b2_ref[...]
    )                                                    # (TILE_B, D)


# ------------------------------- Wrapper ---------------------------------- #
def _round_up(x: int, m: int) -> int:
    return ((x + m - 1) // m) * m


def ae_decoder_forward(z, params, tile_b: int = 4096):
    """z: (B, latent_dim) float32. params = (w1, b1, w2, b2) in torch layout
    (w: (out, in), b: (out,)). Returns (B, total_op_dim) float32."""
    w1, b1, w2, b2 = params
    B, L = z.shape
    H = w1.shape[0]
    D = w2.shape[0]

    # --- batch tile selection -------------------------------------------- #
    tile_b = int(tile_b)
    tile_b = max(128, min(tile_b, 8192))      # amortize step overhead; VMEM cap
    tile_b = _round_up(tile_b, 128)
    if B > 256:
        # >= 2 grid tiles so a v7x chip can shard the batch across both TCs.
        tile_b = min(tile_b, _round_up(-(-B // 2), 128))
    # Never bigger than needed; exact-fit block for small batches when possible.
    tile_b = min(tile_b, _round_up(B, 8))
    n_tiles = pl.cdiv(B, tile_b)

    # One-time tiny re-layouts (8x32 / 32x16): weights to (in, out), biases 2-D.
    w1t = jnp.asarray(w1, jnp.float32).T               # (L, H)
    w2t = jnp.asarray(w2, jnp.float32).T               # (H, D)
    b1r = jnp.asarray(b1, jnp.float32)[None, :]        # (1, H)
    b2r = jnp.asarray(b2, jnp.float32)[None, :]        # (1, D)

    out = pl.pallas_call(
        decoder_kernel,
        grid=(n_tiles,),
        in_specs=[
            pl.BlockSpec((tile_b, L), lambda i: (i, 0)),   # batch tile (sublanes)
            pl.BlockSpec((L, H), lambda i: (0, 0)),        # resident weights
            pl.BlockSpec((1, H), lambda i: (0, 0)),
            pl.BlockSpec((H, D), lambda i: (0, 0)),
            pl.BlockSpec((1, D), lambda i: (0, 0)),
        ],
        out_specs=pl.BlockSpec((tile_b, D), lambda i: (i, 0)),
        out_shape=jax.ShapeDtypeStruct((B, D), jnp.float32),
        compiler_params=pltpu.CompilerParams(
            dimension_semantics=("parallel",),             # v7x megacore sharding
            vmem_limit_bytes=32 * 1024 * 1024,             # safe headroom on v5e
        ),
    )(z, w1t, b1r, w2t, b2r)

    return out                                             # (B, D)


# --------------------------- Parameter setup ------------------------------ #
def init_linear(key, in_dim, out_dim):
    """PyTorch nn.Linear default init, stored torch-style (out, in)."""
    kw, kb = jax.random.split(key)
    bound = 1.0 / math.sqrt(in_dim)
    w = jax.random.uniform(kw, (out_dim, in_dim), jnp.float32, -bound, bound)
    b = jax.random.uniform(kb, (out_dim,), jnp.float32, -bound, bound)
    return w, b


def build_params(key):
    # structure_config:
    #   discrete_dims = {'a': 3, 'b': 2, 'c': 4}  (2 -> 1)  => 8
    #   real_dims = 8                             => total_op_dim = 16
    #   ae_latent_dimension = 8
    #   decoder_FC_from_latent = {'dims': [32], 'activation': 'tanh'}
    latent_dim, hidden_dim, total_op_dim = 8, 32, 16
    k1, k2 = jax.random.split(key)
    w1, b1 = init_linear(k1, latent_dim, hidden_dim)
    w2, b2 = init_linear(k2, hidden_dim, total_op_dim)
    return (w1, b1, w2, b2), latent_dim, total_op_dim


# ------------------------------ Reference --------------------------------- #
def reference_forward(z, params):
    w1, b1, w2, b2 = params
    h = jnp.tanh(z @ w1.T + b1)
    return jax.nn.sigmoid(h @ w2.T + b2)


# --------------------------------- Main ------------------------------------ #
if __name__ == "__main__":
    key = jax.random.PRNGKey(0)
    k_params, k_z = jax.random.split(key)

    params, latent_dim, total_op_dim = build_params(k_params)

    B = 200                                   # small, non-multiple-of-128 batch
    z = jax.random.normal(k_z, (B, latent_dim), jnp.float32)

    # tile_b=128 -> grid of 2 batch tiles (second tile partial) to exercise the
    # pipelined multi-tile path; default tile_b=4096 is used for real batches.
    out = ae_decoder_forward(z, params, tile_b=128)
    jax.block_until_ready(out)

    ref = reference_forward(z, params)
    assert out.shape == (B, total_op_dim)
    assert jnp.allclose(out, ref, atol=1e-5, rtol=1e-5)

    print("KERNEL_OK")
</pallas_src>

<mosaic_0001>
module attributes {stable_mosaic.version = 11 : i64} {
  func.func @decoder_kernel(%arg0: i32, %arg1: memref<128x8xf32, #tpu.memory_space<vmem>>, %arg2: memref<8x32xf32, #tpu.memory_space<vmem>>, %arg3: memref<1x32xf32, #tpu.memory_space<vmem>>, %arg4: memref<32x16xf32, #tpu.memory_space<vmem>>, %arg5: memref<1x16xf32, #tpu.memory_space<vmem>>, %arg6: memref<128x16xf32, #tpu.memory_space<vmem>>) attributes {dimension_semantics = [#tpu.dimension_semantics<parallel>], iteration_bounds = array<i64: 2>, scalar_prefetch = 0 : i64, scratch_operands = 0 : i64, tpu.core_type = #tpu.core_type<tc>, window_params = [{transform_indices = @transform_0, window_bounds = array<i64: 128, 8>}, {pipeline_mode = #tpu.pipeline_mode<synchronous>, transform_indices = @transform_1, window_bounds = array<i64: 8, 32>}, {pipeline_mode = #tpu.pipeline_mode<synchronous>, transform_indices = @transform_2, window_bounds = array<i64: 1, 32>}, {pipeline_mode = #tpu.pipeline_mode<synchronous>, transform_indices = @transform_3, window_bounds = array<i64: 32, 16>}, {pipeline_mode = #tpu.pipeline_mode<synchronous>, transform_indices = @transform_4, window_bounds = array<i64: 1, 16>}, {transform_indices = @transform_5, window_bounds = array<i64: 128, 16>}]} {
    %c0 = arith.constant 0 : index
    %c0_0 = arith.constant 0 : index
    %0 = vector.load %arg1[%c0, %c0_0] : memref<128x8xf32, #tpu.memory_space<vmem>>, vector<128x8xf32>
    %c0_1 = arith.constant 0 : index
    %c0_2 = arith.constant 0 : index
    %1 = vector.load %arg2[%c0_1, %c0_2] : memref<8x32xf32, #tpu.memory_space<vmem>>, vector<8x32xf32>
    %cst = arith.constant dense<0.000000e+00> : vector<128x32xf32>
    %2 = tpu.matmul %0, %1, %cst {dimension_numbers = #tpu.dot_dimension_numbers<[1], [0], [0], [1], [0, 0, 1, 1], [], []>} : vector<128x8xf32>, vector<8x32xf32>, vector<128x32xf32> -> vector<128x32xf32>
    %c0_3 = arith.constant 0 : index
    %c0_4 = arith.constant 0 : index
    %3 = vector.load %arg3[%c0_3, %c0_4] : memref<1x32xf32, #tpu.memory_space<vmem>>, vector<1x32xf32>
    %4 = vector.broadcast %3 : vector<1x32xf32> to vector<128x32xf32>
    %5 = arith.addf %2, %4 : vector<128x32xf32>
    %6 = math.tanh %5 : vector<128x32xf32>
    %c0_5 = arith.constant 0 : index
    %c0_6 = arith.constant 0 : index
    %7 = vector.load %arg4[%c0_5, %c0_6] : memref<32x16xf32, #tpu.memory_space<vmem>>, vector<32x16xf32>
    %cst_7 = arith.constant dense<0.000000e+00> : vector<128x16xf32>
    %8 = tpu.matmul %6, %7, %cst_7 {dimension_numbers = #tpu.dot_dimension_numbers<[1], [0], [0], [1], [0, 0, 1, 1], [], []>} : vector<128x32xf32>, vector<32x16xf32>, vector<128x16xf32> -> vector<128x16xf32>
    %c0_8 = arith.constant 0 : index
    %c0_9 = arith.constant 0 : index
    %9 = vector.load %arg5[%c0_8, %c0_9] : memref<1x16xf32, #tpu.memory_space<vmem>>, vector<1x16xf32>
    %10 = vector.broadcast %9 : vector<1x16xf32> to vector<128x16xf32>
    %11 = arith.addf %8, %10 : vector<128x16xf32>
    %12 = arith.negf %11 : vector<128x16xf32>
    %13 = math.exp %12 : vector<128x16xf32>
    %cst_10 = arith.constant 1.000000e+00 : f32
    %14 = vector.broadcast %cst_10 : f32 to vector<128x16xf32>
    %15 = arith.addf %14, %13 : vector<128x16xf32>
    %16 = arith.divf %14, %15 : vector<128x16xf32>
    %c0_11 = arith.constant 0 : index
    %c0_12 = arith.constant 0 : index
    %17 = vector.load %arg6[%c0_11, %c0_12] : memref<128x16xf32, #tpu.memory_space<vmem>>, vector<128x16xf32>
    tpu.vector_store %arg6[%c0_11, %c0_12], %16 {strides = array<i32>} : memref<128x16xf32, #tpu.memory_space<vmem>>, vector<128x16xf32>,
    return
  }
  func.func @transform_0(%arg0: i32) -> (i32, i32) {
    %c0_i32 = arith.constant 0 : i32
    %c0_i32_0 = arith.constant 0 : i32
    return %arg0, %c0_i32 : i32, i32
  }
  func.func @transform_1(%arg0: i32) -> (i32, i32) {
    %c0_i32 = arith.constant 0 : i32
    %c0_i32_0 = arith.constant 0 : i32
    %c0_i32_1 = arith.constant 0 : i32
    return %c0_i32, %c0_i32_0 : i32, i32
  }
  func.func @transform_2(%arg0: i32) -> (i32, i32) {
    %c0_i32 = arith.constant 0 : i32
    %c0_i32_0 = arith.constant 0 : i32
    %c0_i32_1 = arith.constant 0 : i32
    return %c0_i32, %c0_i32_0 : i32, i32
  }
  func.func @transform_3(%arg0: i32) -> (i32, i32) {
    %c0_i32 = arith.constant 0 : i32
    %c0_i32_0 = arith.constant 0 : i32
    %c0_i32_1 = arith.constant 0 : i32
    return %c0_i32, %c0_i32_0 : i32, i32
  }
  func.func @transform_4(%arg0: i32) -> (i32, i32) {
    %c0_i32 = arith.constant 0 : i32
    %c0_i32_0 = arith.constant 0 : i32
    %c0_i32_1 = arith.constant 0 : i32
    return %c0_i32, %c0_i32_0 : i32, i32
  }
  func.func @transform_5(%arg0: i32) -> (i32, i32) {
    %c0_i32 = arith.constant 0 : i32
    %c0_i32_0 = arith.constant 0 : i32
    return %arg0, %c0_i32 : i32, i32
  }
}

</mosaic_0001>

<bundles_post_ra>
// kernel: tpu_custom_call.1
= control target key start
LH: loop header
LB: loop body
LE: loop exit
PB: predicated region body
PF: predicated region fallthrough
CT: control target
= control target key end

     0   :  { %s1555_s18 = smov 0   ;;  %s1557_s19 = smov 0   ;;  %s1834_s0 = inlined_call_operand.vmem [shape: f32[200,8], index: 0, kind: input, shape index: {}]   ;;  %s1835_s1 = inlined_call_operand.vmem [shape: f32[8,32], index: 1, kind: input, shape index: {}]   ;;  %s1836_s2 = inlined_call_operand.vmem [shape: f32[1,32], index: 2, kind: input, shape index: {}]   ;;  %s1837_s3 = inlined_call_operand.vmem [shape: f32[32,16], index: 3, kind: input, shape index: {}]   ;;  %s1838_s4 = inlined_call_operand.vmem [shape: f32[1,16], index: 4, kind: input, shape index: {}]   ;;  %s1839_s5 = inlined_call_operand.vmem [shape: f32[200,16], index: 5, kind: output, shape index: {}]  }
   0x1   :  { %s1559_s20 = smov 0  }
   0x2 LB: > { %s1568_s21 = sadd.s32 4294967295, %s1491_s20   ;;  %s1570_s22 = sadd.s32 1, %s1491_s20   ;;  %s1491_s20 = sphi %s1559_s20, %s1846_s20   ;;  %s1487_s19 = sphi %s1557_s19, %s1845_s19   ;;  %s1483_s18 = sphi %s1555_s18, %s1844_s18  }
   0x3   : > { %s129_s23 = ssub.s32 %s1491_s20, %s1570_s22  ;;  %s132_s24 = sadd.s32 1, %s1487_s19 }
   0x4   : > { %p130_p0 = scmp.eq.s32.totalorder %s129_s23, 0  ;;  %p142_p1 = scmp.ne.s32.totalorder %s1487_s19, %s1483_s18 }
   0x5   : > { %p143_p2 = scmp.eq.s32.totalorder %s1568_s21, 1  ;;  %p1076_p3 = scmp.ge.s32.totalorder %s1491_s20, 1 }
   0x6   : > { %s1578_s25 = scalar_select %p130_p0, %s1487_s19, %s132_s24  }
   0x7   : > { %p1580_p4 = por %p143_p2, %p142_p1  ;;  %p196_p5 = scmp.lt.s32.totalorder %s1491_s20, 3 }
   0x9   : > { %p197_p6 = pnand %p1076_p3, %p196_p5 }
   0xa   : > { %v262_v0 = vld [vmem:[%s1835_s1] sm:$0xff] (!%p197_p6)  ;;  %s1588_s29 = sshll.u32 (!%p197_p6), %s1568_s21, 4  ;;  %vm270_vm0 = vcmask (!%p197_p6), 64512   ;;  %v481_v18 = vld [vmem:[%s1837_s3 + $0x8] sm:$0xff] (!%p197_p6)  ;;  %v482_v20 = vld [vmem:[%s1837_s3 + $0x10] sm:$0xff] (!%p197_p6)  ;;  %vm491_vm1 = vcmask (!%p197_p6), 261120  }
   0xb   : > { %200 = sbr.rel (%p197_p6) target bundleno = 572 (0x23c), region = 40  ;;  %1187 = vmatprep.subr.mxu0 (!%p197_p6), %v262_v0  ;;  %p232_p7 = scmp.lt.s32.totalorder (!%p197_p6), %s1588_s29, 24  ;;  %v480_v17 = vld [vmem:[%s1837_s3] sm:$0xff] (!%p197_p6)  ;;  %v483_v21 = vld [vmem:[%s1837_s3 + $0x18] sm:$0xff] (!%p197_p6)  ;;  %vm781_vm2 = vcmask (!%p197_p6), 130048  }
   0xc   : > { %1188 = vmatpush3.msra.mxu0 (!%p197_p6), %v262_v0  ;;  %v1245_v19 = vpack.c.bf16 (!%p197_p6), %v481_v18, %v480_v17  ;;  %v1249_v22 = vpack.c.bf16 (!%p197_p6), %v483_v21, %v482_v20  ;;  %v1644_v23 = vld [vmem:[%s1836_s2] ss:$0 sm:$0xff] (!%p197_p6)  ;;  %s224_s28 = sand.u32 (!%p197_p6), 1, %s1483_s18  }
   0xe   : > { %1246 = vmatprep.subr.bf16.mxu1 (!%p197_p6), %v1245_v19 }
   0xf   : > { %1248 = vmatpush3.bf16.msra.mxu1 (!%p197_p6), %v1245_v19 }
  0x10   : > { %1250 = vmatprep.subr.bf16.mxu1 (!%p197_p6), %v1249_v22 }
  0x12   : > { %s233_s30 = scalar_select %p232_p7, %s1588_s29, 24 }
  0x13   : > { %1252 = vmatpush3.bf16.msra.mxu1 %v1249_v22  ;;  %s1147_s7 = sshll.u32 (%p1580_p4), %s1568_s21, 7 }
  0x14   : > { %s1079_s6 = sshll.u32 %s233_s30, 3  ;;  %s1077_s30 = sshll.u32 %s224_s28, 7 }
  0x15   : > { %s1595_s9 = scalar_lea.vmem %s1834_s0, %s1079_s6  ;;  %s1698_s18 = scalar_lea.vmem [#allocation2], %s1077_s30  }
  0x16   : > { %v246_v1 = vld [vmem:[%s1595_s9] sm:$0xff]  ;;  %v247_v2 = vld [vmem:[%s1595_s9 + $0x8] sm:$0xff]  ;;  %v248_v3 = vld [vmem:[%s1595_s9 + $0x10] sm:$0xff]  ;;  %s806_s6 = ssub.s32 (%p1580_p4), 25, %s1588_s29  ;;  %s1741_s10 = scalar_lea.vmem (%p1580_p4), %s1839_s5, %s1147_s7  }
  0x17   : > { %1189 = vmatprep.mubr.msk.f32.mxu0 %vm270_vm0, %v246_v1  ;;  %v249_v4 = vld [vmem:[%s1595_s9 + $0x18] sm:$0xff]  ;;  %v250_v5 = vld [vmem:[%s1595_s9 + $0x20] sm:$0xff]  ;;  %v251_v6 = vld [vmem:[%s1595_s9 + $0x28] sm:$0xff]  ;;  %p807_p8 = scmp.lt.s32.totalorder (%p1580_p4), %s806_s6, 16 }
  0x18   : > { %1190 = vmatmul.mubr.msk.f32.vlgmr.msra.gmra.mrb[0].mxu0 %vm270_vm0, %v247_v2  ;;  %v252_v7 = vld [vmem:[%s1595_s9 + $0x30] sm:$0xff]  ;;  %v253_v8 = vld [vmem:[%s1595_s9 + $0x38] sm:$0xff]  ;;  %v254_v9 = vld [vmem:[%s1595_s9 + $0x40] sm:$0xff] }
  0x19   : > { %1192 = vmatprep.mubr.msk.f32.mxu0 %vm270_vm0, %v248_v3  ;;  %v255_v10 = vld [vmem:[%s1595_s9 + $0x48] sm:$0xff]  ;;  %v256_v11 = vld [vmem:[%s1595_s9 + $0x50] sm:$0xff]  ;;  %v257_v12 = vld [vmem:[%s1595_s9 + $0x58] sm:$0xff] }
  0x1a   : > { %v258_v13 = vld [vmem:[%s1595_s9 + $0x60] sm:$0xff]  ;;  %v259_v14 = vld [vmem:[%s1595_s9 + $0x68] sm:$0xff]  ;;  %v260_v15 = vld [vmem:[%s1595_s9 + $0x70] sm:$0xff] }
  0x1b   : > { %v261_v16 = vld [vmem:[%s1595_s9 + $0x78] sm:$0xff] }
  0x1c   : > { %1193 = vmatmul.mubr.msk.f32.gmra.mrb[2].mxu0 %vm270_vm0, %v249_v4 }
  0x1d   : > { %1195 = vmatprep.mubr.msk.f32.mxu0 %vm270_vm0, %v250_v5 }
  0x20   : > { %1196 = vmatmul.mubr.msk.f32.gmra.mrb[4].mxu0 %vm270_vm0, %v251_v6 }
  0x21   : > { %1198 = vmatprep.mubr.msk.f32.mxu0 %vm270_vm0, %v252_v7 }
  0x24   : > { %1199 = vmatmul.mubr.msk.f32.gmra.mrb[6].mxu0 %vm270_vm0, %v253_v8  ;;  %v1681_v8 = vld [vmem:[%s1838_s4] ss:$0 sm:$0xff] }
  0x25   : > { %1201 = vmatprep.mubr.msk.f32.mxu0 %vm270_vm0, %v254_v9 }
  0x28   : > { %1202 = vmatmul.mubr.msk.f32.gmra.mrb[8].mxu0 %vm270_vm0, %v255_v10 }
  0x29   : > { %1204 = vmatprep.mubr.msk.f32.mxu0 %vm270_vm0, %v256_v11 }
  0x2c   : > { %1205 = vmatmul.mubr.msk.f32.gmra.mrb[10].mxu0 %vm270_vm0, %v257_v12 }
  0x2d   : > { %1207 = vmatprep.mubr.msk.f32.mxu0 %vm270_vm0, %v258_v13 }
  0x30   : > { %1208 = vmatmul.mubr.msk.f32.gmra.mrb[12].mxu0 %vm270_vm0, %v259_v14 }
  0x31   : > { %1210 = vmatprep.mubr.msk.f32.mxu0 %vm270_vm0, %v260_v15 }
  0x34   : > { %1211 = vmatmul.mubr.msk.f32.gmra.mrb[14].mxu0 %vm270_vm0, %v261_v16 }
  0xeb   : > { %v1191_v24 = vpop.f32.mrb[0].mxu0 }
  0xec   : > { %v391_v25 = vadd.f32 %v1191_v24, %v1644_v23  ;;  %v385_v26 = vpop.f32.mrb[1].mxu0 }
  0xed   : > { %v386_v27 = vadd.f32 %v1644_v23, %v385_v26 }
  0xef   : > { %1341 = vtanh.f32 %v386_v27  ;;  %v1194_v28 = vpop.f32.mrb[2].mxu0 }
  0xf0   : > { %1343 = vtanh.f32 %v391_v25  ;;  %v401_v29 = vadd.f32 %v1194_v28, %v1644_v23  ;;  %v395_v30 = vpop.f32.mrb[3].mxu0 }
  0xf1   : > { %v396_v31 = vadd.f32 %v1644_v23, %v395_v30 }
  0xf3   : > { %1345 = vtanh.f32 %v396_v31  ;;  %v1197_v32 = vpop.f32.mrb[4].mxu0 }
  0xf4   : > { %1347 = vtanh.f32 %v401_v29  ;;  %v411_v33 = vadd.f32 %v1197_v32, %v1644_v23  ;;  %v405_v34 = vpop.f32.mrb[5].mxu0 }
  0xf5   : > { %v406_v35 = vadd.f32 %v1644_v23, %v405_v34 }
  0xf7   : > { %1349 = vtanh.f32 %v406_v35  ;;  %v1200_v36 = vpop.f32.mrb[6].mxu0 }
  0xf8   : > { %1351 = vtanh.f32 %v411_v33  ;;  %v421_v37 = vadd.f32 %v1200_v36, %v1644_v23  ;;  %v415_v38 = vpop.f32.mrb[7].mxu0 }
  0xf9   : > { %v1342_v39 = vpop.eup %1341  ;;  %v416_v40 = vadd.f32 %v1644_v23, %v415_v38 }
  0xfa   : > { %v1344_v41 = vpop.eup %1343  ;;  %1221 = vmatprep.mubr.msk.f32.mxu1 %vm491_vm1, %v1342_v39 }
  0xfb   : > { %1353 = vtanh.f32 %v416_v40  ;;  %v1203_v42 = vpop.f32.mrb[8].mxu0  ;;  %1222 = vmatmul.mubr.msk.f32.vlgmr.msra.gmra.mrb[0].mxu1 %vm491_vm1, %v1344_v41 }
  0xfc   : > { %1355 = vtanh.f32 %v421_v37  ;;  %v431_v43 = vadd.f32 %v1203_v42, %v1644_v23  ;;  %v425_v44 = vpop.f32.mrb[9].mxu0 }
  0xfd   : > { %v1346_v45 = vpop.eup %1345  ;;  %v426_v46 = vadd.f32 %v1644_v23, %v425_v44 }
  0xfe   : > { %v1348_v47 = vpop.eup %1347  ;;  %1224 = vmatprep.mubr.msk.f32.mxu1 %vm491_vm1, %v1346_v45 }
  0xff   : > { %1357 = vtanh.f32 %v426_v46  ;;  %v1206_v48 = vpop.f32.mrb[10].mxu0  ;;  %1225 = vmatmul.mubr.msk.f32.gmra.mrb[2].mxu1 %vm491_vm1, %v1348_v47 }
 0x100   : > { %1359 = vtanh.f32 %v431_v43  ;;  %v441_v49 = vadd.f32 %v1206_v48, %v1644_v23  ;;  %v435_v50 = vpop.f32.mrb[11].mxu0 }
 0x101   : > { %v1350_v51 = vpop.eup %1349  ;;  %v436_v52 = vadd.f32 %v1644_v23, %v435_v50 }
 0x102   : > { %v1352_v53 = vpop.eup %1351  ;;  %1227 = vmatprep.mubr.msk.f32.mxu1 %vm491_vm1, %v1350_v51 }
 0x103   : > { %1361 = vtanh.f32 %v436_v52  ;;  %v1209_v54 = vpop.f32.mrb[12].mxu0  ;;  %1228 = vmatmul.mubr.msk.f32.gmra.mrb[4].mxu1 %vm491_vm1, %v1352_v53 }
 0x104   : > { %1363 = vtanh.f32 %v441_v49  ;;  %v451_v55 = vadd.f32 %v1209_v54, %v1644_v23  ;;  %v445_v56 = vpop.f32.mrb[13].mxu0 }
 0x105   : > { %v1354_v57 = vpop.eup %1353  ;;  %v446_v58 = vadd.f32 %v1644_v23, %v445_v56 }
 0x106   : > { %v1356_v59 = vpop.eup %1355  ;;  %1230 = vmatprep.mubr.msk.f32.mxu1 %vm491_vm1, %v1354_v57 }
 0x107   : > { %1365 = vtanh.f32 %v446_v58  ;;  %v1212_v60 = vpop.f32.mrb[14].mxu0  ;;  %1231 = vmatmul.mubr.msk.f32.gmra.mrb[6].mxu1 %vm491_vm1, %v1356_v59 }
 0x108   : > { %1367 = vtanh.f32 %v451_v55  ;;  %v461_v61 = vadd.f32 %v1212_v60, %v1644_v23  ;;  %v455_v62 = vpop.f32.mrb[15].mxu0 }
 0x109   : > { %v1358_v63 = vpop.eup %1357  ;;  %v456_v0 = vadd.f32 %v1644_v23, %v455_v62 }
 0x10a   : > { %v1360_v1 = vpop.eup %1359  ;;  %1233 = vmatprep.mubr.msk.f32.mxu1 %vm491_vm1, %v1358_v63 }
 0x10b   : > { %1369 = vtanh.f32 %v456_v0  ;;  %1234 = vmatmul.mubr.msk.f32.gmra.mrb[8].mxu1 %vm491_vm1, %v1360_v1 }
 0x10c   : > { %1371 = vtanh.f32 %v461_v61 }
 0x10d   : > { %v1362_v2 = vpop.eup %1361 }
 0x10e   : > { %v1364_v3 = vpop.eup %1363  ;;  %1236 = vmatprep.mubr.msk.f32.mxu1 %vm491_vm1, %v1362_v2 }
 0x10f   : > { %1237 = vmatmul.mubr.msk.f32.gmra.mrb[10].mxu1 %vm491_vm1, %v1364_v3 }
 0x111   : > { %v1366_v4 = vpop.eup %1365 }
 0x112   : > { %v1368_v5 = vpop.eup %1367  ;;  %1239 = vmatprep.mubr.msk.f32.mxu1 %vm491_vm1, %v1366_v4 }
 0x113   : > { %1240 = vmatmul.mubr.msk.f32.gmra.mrb[12].mxu1 %vm491_vm1, %v1368_v5 }
 0x115   : > { %v1370_v6 = vpop.eup %1369 }
 0x116   : > { %v1372_v7 = vpop.eup %1371  ;;  %1242 = vmatprep.mubr.msk.f32.mxu1 %vm491_vm1, %v1370_v6 }
 0x117   : > { %1243 = vmatmul.mubr.msk.f32.gmra.mrb[14].mxu1 %vm491_vm1, %v1372_v7 }
 0x1ce   : > { %v1223_v9 = vpop.f32.mrb[0].mxu1 }
 0x1cf   : > { %v612_v10 = vadd.f32 %v1223_v9, %v1681_v8  ;;  %v606_v11 = vpop.f32.mrb[1].mxu1 }
 0x1d0   : > { %v607_v12 = vadd.f32 %v1681_v8, %v606_v11 }
 0x1d1   : > { %v1115_v13 = vmul.f32 -1.442695, %v612_v10 }
 0x1d2   : > { %v1114_v14 = vmul.f32 -1.442695, %v607_v12  ;;  %v1226_v15 = vpop.f32.mrb[2].mxu1 }
 0x1d3   : > { %1373 = vpow2.f32 %v1115_v13  ;;  %v622_v16 = vadd.f32 %v1226_v15, %v1681_v8  ;;  %v616_v17 = vpop.f32.mrb[3].mxu1 }
 0x1d4   : > { %1375 = vpow2.f32 %v1114_v14  ;;  %v617_v18 = vadd.f32 %v1681_v8, %v616_v17 }
 0x1d5   : > { %v1117_v19 = vmul.f32 -1.442695, %v622_v16 }
 0x1d6   : > { %v1116_v20 = vmul.f32 -1.442695, %v617_v18  ;;  %v1229_v21 = vpop.f32.mrb[4].mxu1 }
 0x1d7   : > { %1377 = vpow2.f32 %v1117_v19  ;;  %v632_v22 = vadd.f32 %v1229_v21, %v1681_v8  ;;  %v626_v23 = vpop.f32.mrb[5].mxu1 }
 0x1d8   : > { %1379 = vpow2.f32 %v1116_v20  ;;  %v627_v24 = vadd.f32 %v1681_v8, %v626_v23 }
 0x1d9   : > { %v1119_v25 = vmul.f32 -1.442695, %v632_v22 }
 0x1da   : > { %v1118_v26 = vmul.f32 -1.442695, %v627_v24  ;;  %v1232_v27 = vpop.f32.mrb[6].mxu1 }
 0x1db   : > { %1381 = vpow2.f32 %v1119_v25  ;;  %v642_v28 = vadd.f32 %v1232_v27, %v1681_v8  ;;  %v636_v29 = vpop.f32.mrb[7].mxu1 }
 0x1dc   : > { %1383 = vpow2.f32 %v1118_v26  ;;  %v637_v30 = vadd.f32 %v1681_v8, %v636_v29 }
 0x1dd   : > { %v1374_v31 = vpop.eup %1373  ;;  %v1121_v32 = vmul.f32 -1.442695, %v642_v28 }
 0x1de   : > { %v1376_v33 = vpop.eup %1375  ;;  %v734_v34 = vadd.f32 1.0, %v1374_v31  ;;  %v1120_v35 = vmul.f32 -1.442695, %v637_v30  ;;  %v1235_v36 = vpop.f32.mrb[8].mxu1 }
 0x1df   : > { %v733_v37 = vadd.f32 1.0, %v1376_v33  ;;  %1385 = vpow2.f32 %v1121_v32  ;;  %v652_v38 = vadd.f32 %v1235_v36, %v1681_v8  ;;  %v646_v39 = vpop.f32.mrb[9].mxu1 }
 0x1e0   : > { %1387 = vrcp.f32 %v734_v34  ;;  %v647_v40 = vadd.f32 %v1681_v8, %v646_v39 }
 0x1e1   : > { %v1378_v41 = vpop.eup %1377  ;;  %1389 = vrcp.f32 %v733_v37  ;;  %v1123_v42 = vmul.f32 -1.442695, %v652_v38 }
 0x1e2   : > { %v1380_v43 = vpop.eup %1379  ;;  %v736_v44 = vadd.f32 1.0, %v1378_v41  ;;  %1391 = vpow2.f32 %v1120_v35  ;;  %v1122_v45 = vmul.f32 -1.442695, %v647_v40  ;;  %v1238_v46 = vpop.f32.mrb[10].mxu1 }
 0x1e3   : > { %v735_v47 = vadd.f32 1.0, %v1380_v43  ;;  %1393 = vpow2.f32 %v1123_v42  ;;  %v662_v48 = vadd.f32 %v1238_v46, %v1681_v8  ;;  %v656_v49 = vpop.f32.mrb[11].mxu1 }
 0x1e4   : > { %1395 = vrcp.f32 %v736_v44  ;;  %v657_v50 = vadd.f32 %v1681_v8, %v656_v49 }
 0x1e5   : > { %v1382_v51 = vpop.eup %1381  ;;  %1397 = vrcp.f32 %v735_v47  ;;  %v1125_v52 = vmul.f32 -1.442695, %v662_v48 }
 0x1e6   : > { %v1384_v53 = vpop.eup %1383  ;;  %v738_v54 = vadd.f32 1.0, %v1382_v51  ;;  %1399 = vpow2.f32 %v1122_v45  ;;  %v1124_v55 = vmul.f32 -1.442695, %v657_v50  ;;  %v1241_v56 = vpop.f32.mrb[12].mxu1 }
 0x1e7   : > { %v737_v57 = vadd.f32 1.0, %v1384_v53  ;;  %1401 = vpow2.f32 %v1125_v52  ;;  %v672_v58 = vadd.f32 %v1241_v56, %v1681_v8  ;;  %v666_v59 = vpop.f32.mrb[13].mxu1 }
 0x1e8   : > { %1403 = vrcp.f32 %v738_v54  ;;  %v667_v60 = vadd.f32 %v1681_v8, %v666_v59 }
 0x1e9   : > { %v1386_v61 = vpop.eup %1385  ;;  %1405 = vrcp.f32 %v737_v57  ;;  %v1127_v62 = vmul.f32 -1.442695, %v672_v58 }
 0x1ea   : > { %v1388_v63 = vpop.eup %1387  ;;  %v740_v0 = vadd.f32 1.0, %v1386_v61  ;;  %1407 = vpow2.f32 %v1124_v55  ;;  %v1126_v1 = vmul.f32 -1.442695, %v667_v60  ;;  %v1244_v2 = vpop.f32.mrb[14].mxu1 }
 0x1eb   : > { %v1390_v3 = vpop.eup %1389  ;;  %783 = vst.msk [vmem:[%s1698_s18 + $0x8] sm:$0xff] %vm781_vm2, %v1388_v63  ;;  %1409 = vpow2.f32 %v1127_v62  ;;  %v682_v4 = vadd.f32 %v1244_v2, %v1681_v8  ;;  %v676_v5 = vpop.f32.mrb[15].mxu1 }
 0x1ec   : > { %v1392_v6 = vpop.eup %1391  ;;  %782 = vst.msk [vmem:[%s1698_s18] sm:$0xff] %vm781_vm2, %v1390_v3  ;;  %1411 = vrcp.f32 %v740_v0  ;;  %v677_v7 = vadd.f32 %v1681_v8, %v676_v5 }
 0x1ed   : > { %v1394_v9 = vpop.eup %1393  ;;  %v739_v10 = vadd.f32 1.0, %v1392_v6  ;;  %1413 = vpow2.f32 %v1126_v1  ;;  %v1129_v11 = vmul.f32 -1.442695, %v682_v4 }
 0x1ee   : > { %v1396_v12 = vpop.eup %1395  ;;  %v742_v13 = vadd.f32 1.0, %v1394_v9  ;;  %v1128_v14 = vmul.f32 -1.442695, %v677_v7 }
 0x1ef   : > { %v1398_v15 = vpop.eup %1397  ;;  %785 = vst.msk [vmem:[%s1698_s18 + $0x18] sm:$0xff] %vm781_vm2, %v1396_v12  ;;  %1415 = vrcp.f32 %v739_v10 }
 0x1f0   : > { %v1400_v16 = vpop.eup %1399  ;;  %784 = vst.msk [vmem:[%s1698_s18 + $0x10] sm:$0xff] %vm781_vm2, %v1398_v15  ;;  %1417 = vrcp.f32 %v742_v13 }
 0x1f1   : > { %v1402_v17 = vpop.eup %1401  ;;  %v741_v18 = vadd.f32 1.0, %v1400_v16  ;;  %1419 = vpow2.f32 %v1129_v11 }
 0x1f2   : > { %v1404_v8 = vpop.eup %1403  ;;  %v744_v19 = vadd.f32 1.0, %v1402_v17  ;;  %1421 = vpow2.f32 %v1128_v14 }
 0x1f3   : > { %v1406_v20 = vpop.eup %1405  ;;  %787 = vst.msk [vmem:[%s1698_s18 + $0x28] sm:$0xff] %vm781_vm2, %v1404_v8  ;;  %1423 = vrcp.f32 %v741_v18 }
 0x1f4   : > { %v1408_v21 = vpop.eup %1407  ;;  %786 = vst.msk [vmem:[%s1698_s18 + $0x20] sm:$0xff] %vm781_vm2, %v1406_v20  ;;  %1425 = vrcp.f32 %v744_v19 }
 0x1f5   : > { %v1410_v22 = vpop.eup %1409  ;;  %v743_v23 = vadd.f32 1.0, %v1408_v21 }
 0x1f6   : > { %v1412_v24 = vpop.eup %1411  ;;  %v746_v25 = vadd.f32 1.0, %v1410_v22 }
 0x1f7   : > { %v1414_v26 = vpop.eup %1413  ;;  %789 = vst.msk [vmem:[%s1698_s18 + $0x38] sm:$0xff] %vm781_vm2, %v1412_v24  ;;  %1427 = vrcp.f32 %v743_v23 }
 0x1f8   : > { %1429 = vrcp.f32 %v746_v25  ;;  %v745_v27 = vadd.f32 1.0, %v1414_v26 }
 0x1f9   : > { %v1416_v28 = vpop.eup %1415 }
 0x1fa   : > { %v1418_v29 = vpop.eup %1417  ;;  %788 = vst.msk [vmem:[%s1698_s18 + $0x30] sm:$0xff] %vm781_vm2, %v1416_v28  ;;  %1431 = vrcp.f32 %v745_v27 }
 0x1fb   : > { %v1420_v30 = vpop.eup %1419  ;;  %791 = vst.msk [vmem:[%s1698_s18 + $0x48] sm:$0xff] %vm781_vm2, %v1418_v29 }
 0x1fc   : > { %v1422_v31 = vpop.eup %1421  ;;  %v748_v32 = vadd.f32 1.0, %v1420_v30 }
 0x1fd   : > { %v1424_v33 = vpop.eup %1423  ;;  %v747_v34 = vadd.f32 1.0, %v1422_v31 }
 0x1fe   : > { %v1426_v35 = vpop.eup %1425  ;;  %790 = vst.msk [vmem:[%s1698_s18 + $0x40] sm:$0xff] %vm781_vm2, %v1424_v33  ;;  %1433 = vrcp.f32 %v748_v32 }
 0x1ff   : > { %793 = vst.msk [vmem:[%s1698_s18 + $0x58] sm:$0xff] %vm781_vm2, %v1426_v35  ;;  %1435 = vrcp.f32 %v747_v34 }
 0x201   : > { %v1428_v36 = vpop.eup %1427 }
 0x202   : > { %v1430_v37 = vpop.eup %1429  ;;  %792 = vst.msk [vmem:[%s1698_s18 + $0x50] sm:$0xff] %vm781_vm2, %v1428_v36 }
 0x203   : > { %795 = vst.msk [vmem:[%s1698_s18 + $0x68] sm:$0xff] %vm781_vm2, %v1430_v37 }
 0x204   : > { %v1432_v38 = vpop.eup %1431  ;;  %804 = sbr.rel (!%p1580_p4) target bundleno = 572 (0x23c), region = 44 }
 0x205   : > { %794 = vst.msk [vmem:[%s1698_s18 + $0x60] sm:$0xff] %vm781_vm2, %v1432_v38 }
 0x208   : > { %v1434_v39 = vpop.eup %1433 }
 0x209   : > { %v1436_v40 = vpop.eup %1435  ;;  %797 = vst.msk [vmem:[%s1698_s18 + $0x78] sm:$0xff] %vm781_vm2, %v1434_v39 }
 0x20a   : > { %796 = vst.msk [vmem:[%s1698_s18 + $0x70] sm:$0xff] %vm781_vm2, %v1436_v40 }
 0x20b   : > { %s1848_s6 = smov (!%p807_p8, %s806_s6), 16 }
 0x20c   : > { %s1132_s11 = sshll.u32 %s1848_s6, 7 }
 0x20d   : > { %p1135_p9 = scmp.eq.s32.totalorder %s1132_s11, 0 }
 0x20e   : > { %s1747_s12 = sshrl.u32 (!%p1135_p9), %s1848_s6, 4 }
 0x20f   : > { %815 = sbr.rel (%p1135_p9) target bundleno = 572 (0x23c), region = 48  ;;  %p1136_p10 = scmp.le.s32.totalorder (!%p1135_p9), %s1747_s12, 0 }
 0x216   : > { %1029 = sbr.rel (%p1136_p10) target bundleno = 551 (0x227), region = 124  ;;  %s1841_s21 = smov (!%p1136_p10), %s1741_s10 }
 0x217   : > { %s1842_s26 = smov (!%p1136_p10), %s1698_s18  ;;  %s1756_s29 = smov (!%p1136_p10), 0  }
 0x218   : > { %s1758_s13 = smov (!%p1136_p10), 0  }
 0x21d LB: >> { %v907_v41 = vld [vmem:[%s1499_s26] sm:$0xff]  ;;  %v909_v42 = vld [vmem:[%s1499_s26 + $0x8] sm:$0xff]  ;;  %v911_v43 = vld [vmem:[%s1499_s26 + $0x10] sm:$0xff]  ;;  %s939_s14 = sadd.s32 1, %s1503_s29  ;;  %s901_s13 = sadd.s32 1, %s1507_s13   ;;  %s1507_s13 = sphi %s1758_s13, %s901_s13   ;;  %s1503_s29 = sphi %s1756_s29, %s1843_s29   ;;  %s1499_s26 = sphi %s1842_s26, %s944_s26   ;;  %s1495_s21 = sphi %s1841_s21, %s945_s21  }
 0x21e   : >> { %908 = vst [vmem:[%s1495_s21] sm:$0xff] %v907_v41  ;;  %910 = vst [vmem:[%s1495_s21 + $0x8] sm:$0xff] %v909_v42  ;;  %v913_v44 = vld [vmem:[%s1499_s26 + $0x18] sm:$0xff]  ;;  %v915_v45 = vld [vmem:[%s1499_s26 + $0x20] sm:$0xff]  ;;  %p940_p11 = scmp.ge.s32.totalorder %s939_s14, %s1747_s12  ;;  %p900_p12 = scmp.ge.s32.totalorder %s901_s13, %s1747_s12 }
 0x21f   : >> { %912 = vst [vmem:[%s1495_s21 + $0x10] sm:$0xff] %v911_v43  ;;  %v917_v46 = vld [vmem:[%s1499_s26 + $0x28] sm:$0xff]  ;;  %914 = vst [vmem:[%s1495_s21 + $0x18] sm:$0xff] %v913_v44  ;;  %v919_v47 = vld [vmem:[%s1499_s26 + $0x30] sm:$0xff] }
 0x220   : >> { %916 = vst [vmem:[%s1495_s21 + $0x20] sm:$0xff] %v915_v45  ;;  %918 = vst [vmem:[%s1495_s21 + $0x28] sm:$0xff] %v917_v46  ;;  %v921_v48 = vld [vmem:[%s1499_s26 + $0x38] sm:$0xff]  ;;  %v923_v49 = vld [vmem:[%s1499_s26 + $0x40] sm:$0xff]  ;;  %s1850_s14 = smov (%p940_p11, %s939_s14), 0  ;;  %903 = sbr.rel (!%p900_p12) target bundleno = 541 (0x21d), region = 130 }
 0x221   : >> { %920 = vst [vmem:[%s1495_s21 + $0x30] sm:$0xff] %v919_v47  ;;  %922 = vst [vmem:[%s1495_s21 + $0x38] sm:$0xff] %v921_v48  ;;  %v925_v50 = vld [vmem:[%s1499_s26 + $0x48] sm:$0xff]  ;;  %v927_v51 = vld [vmem:[%s1499_s26 + $0x50] sm:$0xff]  ;;  %s1137_s15 = sshll.u32 %s1850_s14, 7  ;;  %s1843_s29 = smov %s1850_s14 }
 0x222   : >> { %924 = vst [vmem:[%s1495_s21 + $0x40] sm:$0xff] %v923_v49  ;;  %v929_v52 = vld [vmem:[%s1499_s26 + $0x58] sm:$0xff]  ;;  %926 = vst [vmem:[%s1495_s21 + $0x48] sm:$0xff] %v925_v50  ;;  %v931_v53 = vld [vmem:[%s1499_s26 + $0x60] sm:$0xff] }
 0x223   : >> { %928 = vst [vmem:[%s1495_s21 + $0x50] sm:$0xff] %v927_v51  ;;  %930 = vst [vmem:[%s1495_s21 + $0x58] sm:$0xff] %v929_v52  ;;  %v933_v54 = vld [vmem:[%s1499_s26 + $0x68] sm:$0xff]  ;;  %v935_v55 = vld [vmem:[%s1499_s26 + $0x70] sm:$0xff] }
 0x224   : >> { %932 = vst [vmem:[%s1495_s21 + $0x60] sm:$0xff] %v931_v53  ;;  %934 = vst [vmem:[%s1495_s21 + $0x68] sm:$0xff] %v933_v54  ;;  %v937_v56 = vld [vmem:[%s1499_s26 + $0x78] sm:$0xff]  ;;  %s944_s26 = scalar_lea.vmem %s1698_s18, %s1137_s15 [#allocation2]  }
 0x225   : >> { %936 = vst [vmem:[%s1495_s21 + $0x70] sm:$0xff] %v935_v55  ;;  %938 = vst [vmem:[%s1495_s21 + $0x78] sm:$0xff] %v937_v56  ;;  %s945_s21 = scalar_lea.vmem %s1741_s10, %s1137_s15  }
 0x227 PF: > { %s1816_s16 = sand.u32 15, %s1848_s6   ;;  %s1148_s17 = sshll.u32 %s1747_s12, 7 }
 0x228   : > { %s950_s20 = scalar_lea.vmem %s1698_s18, %s1148_s17 [#allocation2]   ;;  %s952_s23 = scalar_lea.vmem %s1741_s10, %s1148_s17  }
 0x229   : > { %p1142_p13 = scmp.le.s32.totalorder %s1816_s16, 0 }
 0x22a   : > { %s1509_s24 = smov (!%p1142_p13), %s952_s23   ;;  %s1513_s27 = smov (!%p1142_p13), %s950_s20  }
 0x22b   : > { %1043 = sbr.rel (%p1142_p13) target bundleno = 572 (0x23c), region = 135  ;;  %s1517_s28 = smov (!%p1142_p13), 0  }
 0x22c   : > { %s1521_s30 = smov (!%p1142_p13), 0  }
 0x232 LB: >> { %v962_v57 = vld [vmem:[%s1515_s27] sm:$0xff]  ;;  %s964_s6 = sadd.s32 1, %s1519_s28  ;;  %s956_s30 = sadd.s32 1, %s1523_s30   ;;  %s1523_s30 = sphi %s1521_s30, %s956_s30   ;;  %s1519_s28 = sphi %s1517_s28, %s1518_s28   ;;  %s1515_s27 = sphi %s1513_s27, %s969_s27   ;;  %s1511_s24 = sphi %s1509_s24, %s970_s24  }
 0x233   : >> { %963 = vst [vmem:[%s1511_s24] sm:$0xff] %v962_v57  ;;  %p965_p0 = scmp.ge.s32.totalorder %s964_s6, %s1816_s16  ;;  %p955_p1 = scmp.ge.s32.totalorder %s956_s30, %s1816_s16 }
 0x235   : >> { %s1852_s6 = smov (%p965_p0, %s964_s6), 0  ;;  %958 = sbr.rel (!%p955_p1) target bundleno = 562 (0x232), region = 141 }
 0x236   : >> { %s1143_s18 = sshll.u32 %s1852_s6, 3  ;;  %s1518_s28 = smov %s1852_s6  }
 0x237   : >> { %s969_s27 = scalar_lea.vmem %s950_s20, %s1143_s18 [#allocation2]   ;;  %s970_s24 = scalar_lea.vmem %s952_s23, %s1143_s18  }
 0x23c PF: > { %p12_p2 = scmp.ge.s32.totalorder %s1570_s22, 4   ;;  %s1844_s18 = smov %s1487_s19 }
 0x23d   : > { %s1845_s19 = smov %s1578_s25  ;;  %s1846_s20 = smov %s1570_s22 }
 0x23e   :  { %14 = sbr.rel (!%p12_p2) target bundleno = 2 (0x2), region = 152 }

</bundles_post_ra>
